<compile_context>
chip_gen: v7x
topology: tpu7x:2x2x1
jax: 0.10.0
libtpu: 0.0.40
codegen_flags: <defaults>
</compile_context>

<pallas_src>
import jax
import jax.numpy as jnp
from jax.experimental import pallas as pl

# ---------------- configuration (mirrors `opt` in run_cnn.py, small synthetic sizes) ----
VOCAB = 50                   # rows of the frozen pretrained embedding matrix
EMB_DIM = 32                 # opt.emb_dim
SEQ_LEN = 16                 # sentence length (multiple of 8 -> tile-aligned pooling view)
BATCH = 2
KERNEL_NUM = 8               # opt.kernel_num
KERNEL_SIZES = (2, 3, 4)     # opt.kernel_sizes = "2 3 4"; opt.kernel_size == len == 3
POLARITIES = 3               # opt.polarities_dim

K_MAX = max(KERNEL_SIZES)                    # 4  -> im2col contraction = K_MAX*EMB_DIM = 128
FEAT_DIM = len(KERNEL_SIZES) * KERNEL_NUM    # 24 (opt.kernel_size * opt.kernel_num)


def make_textcnn_kernel(batch, seq_len, vocab, k_max, feat_dim):
    """Fused: gather + im2col + conv bank + bias/mask + max-over-time + dense."""
    bl = batch * seq_len

    def kernel(ids_ref, emb_ref, wconv_ref, biasmask_ref, wd_ref, bd_ref, out_ref):
        # ids_ref:      (B*L, K_MAX) int32  per-(row, tap) token id, pre-offset by tap*V
        # emb_ref:      (K_MAX*V, K_MAX*E)  block-diagonal embedding table
        # wconv_ref:    (K_MAX*E, F)        stacked, zero-padded conv weights
        # biasmask_ref: (B*L, F)            conv bias where t is valid, -1e30 otherwise
        # wd_ref:       (F, P);  bd_ref: (1, P);  out_ref: (B, P)
        ids = ids_ref[...]

        # One-hot over the combined (tap, vocab) axis.  Because each tap's ids were
        # pre-offset into a disjoint [k*V, (k+1)*V) column range, the K_MAX comparisons
        # can simply be summed (no concatenation, no unaligned slices).
        col = jax.lax.broadcasted_iota(jnp.int32, (bl, k_max * vocab), 1)
        onehot = jnp.zeros((bl, k_max * vocab), jnp.float32)
        for k in range(k_max):
            onehot = onehot + (ids[:, k:k + 1] == col).astype(jnp.float32)

        # Gather + im2col fused: (B*L, K_MAX*V) @ (K_MAX*V, K_MAX*E) -> (B*L, 128).
        im2col = jnp.dot(onehot, emb_ref[...], preferred_element_type=jnp.float32)

        # Whole conv bank in one matmul: contraction 128, output F = 24 lanes.
        conv = jnp.dot(im2col, wconv_ref[...], preferred_element_type=jnp.float32)
        conv = conv + biasmask_ref[...]          # conv bias + (-1e30) on invalid time steps

        # Max-over-time per sentence (L % 8 == 0 -> the reshape is a no-op relayout).
        pooled = jnp.max(conv.reshape(batch, seq_len, feat_dim), axis=1)    # (B, F)

        # Dense classifier: single (B, F) @ (F, P) matmul, lane-dense single store.
        out_ref[...] = (jnp.dot(pooled, wd_ref[...],
                                preferred_element_type=jnp.float32) + bd_ref[...])

    return kernel


def prepare_textcnn_params(embed_matrix, conv_ws, conv_bs, dense_w, dense_b,
                           batch, seq_len):
    """One-time host-side weight re-layout (pure plumbing, no activation compute)."""
    vocab, emb_dim = embed_matrix.shape
    c = conv_ws[0].shape[-1]
    f = len(conv_ws) * c
    bl = batch * seq_len

    # Block-diagonal embedding: tap k occupies rows [k*V,(k+1)*V) x cols [k*E,(k+1)*E).
    emb_bd = jnp.zeros((K_MAX * vocab, K_MAX * emb_dim), jnp.float32)
    for k in range(K_MAX):
        emb_bd = emb_bd.at[k * vocab:(k + 1) * vocab,
                           k * emb_dim:(k + 1) * emb_dim].set(
                               embed_matrix.astype(jnp.float32))

    # Stacked conv weights (K_MAX*E, F); taps k >= kernel_size of a conv stay zero.
    w_stacked = jnp.zeros((K_MAX * emb_dim, f), jnp.float32)
    for idx, (ksz, w) in enumerate(zip(KERNEL_SIZES, conv_ws)):
        for k in range(ksz):
            w_stacked = w_stacked.at[k * emb_dim:(k + 1) * emb_dim,
                                     idx * c:(idx + 1) * c].set(w[k])

    # Conv bias + time-validity mask folded into one additive (B*L, F) tensor.
    bias_vec = jnp.concatenate([b.reshape(1, c) for b in conv_bs], axis=1)        # (1, F)
    lout = jnp.concatenate(
        [jnp.full((1, c), seq_len - ksz + 1, jnp.int32) for ksz in KERNEL_SIZES], axis=1)
    t_of_row = jnp.tile(jnp.arange(seq_len, dtype=jnp.int32), batch).reshape(bl, 1)
    bias_mask = jnp.where(t_of_row < lout, bias_vec,
                          jnp.float32(-1e30)).astype(jnp.float32)

    return dict(emb_bd=emb_bd, w_stacked=w_stacked, bias_mask=bias_mask,
                dense_w=dense_w.astype(jnp.float32), dense_b=dense_b.astype(jnp.float32))


def textcnn_forward(ids, params):
    """ids: (B, L) int32 token indices -> logits (B, P). Single pallas_call, no grid."""
    b_sz, seq_len = ids.shape
    vocab = params["emb_bd"].shape[0] // K_MAX
    feat_dim = params["w_stacked"].shape[1]
    pol = params["dense_w"].shape[1]

    # Per-(position, tap) token ids, clamped inside the sentence (clamped taps either hit
    # zero weights or masked time steps), then offset by tap*V for the fused one-hot.
    tap = jnp.minimum(
        jnp.arange(seq_len, dtype=jnp.int32)[:, None]
        + jnp.arange(K_MAX, dtype=jnp.int32)[None, :],
        seq_len - 1)                                                   # (L, K_MAX)
    ids_taps = jnp.take(ids.astype(jnp.int32), tap, axis=1).reshape(b_sz * seq_len, K_MAX)
    ids_taps = ids_taps + jnp.arange(K_MAX, dtype=jnp.int32)[None, :] * vocab

    kernel = make_textcnn_kernel(b_sz, seq_len, vocab, K_MAX, feat_dim)

    # Single step, whole-array blocks resident in VMEM (<200 KiB total at these sizes).
    # TODO(synk): at realistic sizes (vocab 100k+, emb~300) keep the embedding in HBM via
    # BlockSpec(memory_space=pl.ANY) and row-gather with manual DMA instead of one-hot.
    return pl.pallas_call(
        kernel,
        out_shape=jax.ShapeDtypeStruct((b_sz, pol), jnp.float32),
    )(ids_taps, params["emb_bd"], params["w_stacked"], params["bias_mask"],
      params["dense_w"], params["dense_b"])


def textcnn_reference(ids, embed_matrix, conv_ws, conv_bs, dense_w, dense_b):
    """Pure-JAX reference reproducing the PyTorch forward (dropout = identity)."""
    x = jnp.take(embed_matrix, ids, axis=0).astype(jnp.float32)        # (B, L, E)
    feats = []
    for (w, b), K in zip(zip(conv_ws, conv_bs), KERNEL_SIZES):
        l_out = x.shape[1] - K + 1
        acc = jnp.zeros((x.shape[0], l_out, KERNEL_NUM), jnp.float32)
        for k in range(K):
            acc = acc + jnp.einsum("ble,ec->blc", x[:, k:k + l_out, :], w[k])
        acc = acc + b                                                  # (B, L_out, C)
        feats.append(jnp.max(acc, axis=1))                             # (B, C)
    sen_out = jnp.concatenate(feats, axis=1)                           # (B, F)
    return sen_out @ dense_w + dense_b                                 # (B, P)


if __name__ == "__main__":
    key = jax.random.PRNGKey(0)
    keys = jax.random.split(key, 4 + 2 * len(KERNEL_SIZES))

    # Deterministic synthetic parameters (frozen pretrained embedding + conv/dense weights).
    embed_matrix = jax.random.normal(keys[0], (VOCAB, EMB_DIM), jnp.float32) * 0.1
    ids = jax.random.randint(keys[1], (BATCH, SEQ_LEN), 0, VOCAB, dtype=jnp.int32)

    conv_ws, conv_bs = [], []
    for i, K in enumerate(KERNEL_SIZES):
        # PyTorch Conv1d weight is (C, E, K); stored pre-transposed as (K, E, C).
        conv_ws.append(
            jax.random.normal(keys[2 + 2 * i], (K, EMB_DIM, KERNEL_NUM), jnp.float32) * 0.1)
        conv_bs.append(
            jax.random.normal(keys[3 + 2 * i], (1, KERNEL_NUM), jnp.float32) * 0.1)

    # PyTorch Linear weight is (P, F); stored pre-transposed as (F, P).
    dense_w = jax.random.normal(keys[-2], (FEAT_DIM, POLARITIES), jnp.float32) * 0.1
    dense_b = jax.random.normal(keys[-1], (1, POLARITIES), jnp.float32) * 0.1

    params = prepare_textcnn_params(embed_matrix, conv_ws, conv_bs, dense_w, dense_b,
                                    BATCH, SEQ_LEN)

    fwd = jax.jit(textcnn_forward)
    out = jax.block_until_ready(fwd(ids, params))

    ref = textcnn_reference(ids, embed_matrix, conv_ws, conv_bs, dense_w, dense_b)
    assert out.shape == (BATCH, POLARITIES)
    assert jnp.allclose(out, ref, atol=1e-4, rtol=1e-4), (out, ref)

    print("KERNEL_OK")
</pallas_src>

<mosaic_0001>
module attributes {stable_mosaic.version = 11 : i64} {
  func.func @kernel(%arg0: memref<32x4xi32, #tpu.memory_space<vmem>>, %arg1: memref<200x128xf32, #tpu.memory_space<vmem>>, %arg2: memref<128x24xf32, #tpu.memory_space<vmem>>, %arg3: memref<32x24xf32, #tpu.memory_space<vmem>>, %arg4: memref<24x3xf32, #tpu.memory_space<vmem>>, %arg5: memref<1x3xf32, #tpu.memory_space<vmem>>, %arg6: memref<2x3xf32, #tpu.memory_space<vmem>>) attributes {dimension_semantics = [], scalar_prefetch = 0 : i64, scratch_operands = 0 : i64, tpu.core_type = #tpu.core_type<tc>} {
    %c0 = arith.constant 0 : index
    %c0_0 = arith.constant 0 : index
    %0 = vector.load %arg0[%c0, %c0_0] : memref<32x4xi32, #tpu.memory_space<vmem>>, vector<32x4xi32>
    %1 = tpu.iota {dimensions = array<i32: 1>} : vector<32x200xi32>
    %cst = arith.constant 0.000000e+00 : f32
    %2 = vector.broadcast %cst : f32 to vector<32x200xf32>
    %3 = vector.extract_strided_slice %0 {offsets = [0, 0], sizes = [32, 1], strides = [1, 1]} : vector<32x4xi32> to vector<32x1xi32>
    %4 = vector.broadcast %3 : vector<32x1xi32> to vector<32x200xi32>
    %5 = arith.cmpi eq, %4, %1 : vector<32x200xi32>
    %6 = arith.extui %5 : vector<32x200xi1> to vector<32x200xi32>
    %7 = arith.sitofp %6 : vector<32x200xi32> to vector<32x200xf32>
    %8 = arith.addf %2, %7 : vector<32x200xf32>
    %9 = vector.extract_strided_slice %0 {offsets = [0, 1], sizes = [32, 1], strides = [1, 1]} : vector<32x4xi32> to vector<32x1xi32>
    %10 = vector.broadcast %9 : vector<32x1xi32> to vector<32x200xi32>
    %11 = arith.cmpi eq, %10, %1 : vector<32x200xi32>
    %12 = arith.extui %11 : vector<32x200xi1> to vector<32x200xi32>
    %13 = arith.sitofp %12 : vector<32x200xi32> to vector<32x200xf32>
    %14 = arith.addf %8, %13 : vector<32x200xf32>
    %15 = vector.extract_strided_slice %0 {offsets = [0, 2], sizes = [32, 1], strides = [1, 1]} : vector<32x4xi32> to vector<32x1xi32>
    %16 = vector.broadcast %15 : vector<32x1xi32> to vector<32x200xi32>
    %17 = arith.cmpi eq, %16, %1 : vector<32x200xi32>
    %18 = arith.extui %17 : vector<32x200xi1> to vector<32x200xi32>
    %19 = arith.sitofp %18 : vector<32x200xi32> to vector<32x200xf32>
    %20 = arith.addf %14, %19 : vector<32x200xf32>
    %21 = vector.extract_strided_slice %0 {offsets = [0, 3], sizes = [32, 1], strides = [1, 1]} : vector<32x4xi32> to vector<32x1xi32>
    %22 = vector.broadcast %21 : vector<32x1xi32> to vector<32x200xi32>
    %23 = arith.cmpi eq, %22, %1 : vector<32x200xi32>
    %24 = arith.extui %23 : vector<32x200xi1> to vector<32x200xi32>
    %25 = arith.sitofp %24 : vector<32x200xi32> to vector<32x200xf32>
    %26 = arith.addf %20, %25 : vector<32x200xf32>
    %c0_1 = arith.constant 0 : index
    %c0_2 = arith.constant 0 : index
    %27 = vector.load %arg1[%c0_1, %c0_2] : memref<200x128xf32, #tpu.memory_space<vmem>>, vector<200x128xf32>
    %cst_3 = arith.constant dense<0.000000e+00> : vector<32x128xf32>
    %28 = tpu.matmul %26, %27, %cst_3 {dimension_numbers = #tpu.dot_dimension_numbers<[1], [0], [0], [1], [0, 0, 1, 1], [], []>} : vector<32x200xf32>, vector<200x128xf32>, vector<32x128xf32> -> vector<32x128xf32>
    %c0_4 = arith.constant 0 : index
    %c0_5 = arith.constant 0 : index
    %29 = vector.load %arg2[%c0_4, %c0_5] : memref<128x24xf32, #tpu.memory_space<vmem>>, vector<128x24xf32>
    %cst_6 = arith.constant dense<0.000000e+00> : vector<32x24xf32>
    %30 = tpu.matmul %28, %29, %cst_6 {dimension_numbers = #tpu.dot_dimension_numbers<[1], [0], [0], [1], [0, 0, 1, 1], [], []>} : vector<32x128xf32>, vector<128x24xf32>, vector<32x24xf32> -> vector<32x24xf32>
    %c0_7 = arith.constant 0 : index
    %c0_8 = arith.constant 0 : index
    %31 = vector.load %arg3[%c0_7, %c0_8] : memref<32x24xf32, #tpu.memory_space<vmem>>, vector<32x24xf32>
    %32 = arith.addf %30, %31 : vector<32x24xf32>
    %33 = vector.shape_cast %32 : vector<32x24xf32> to vector<2x16x24xf32>
    %cst_9 = arith.constant dense<0xFF800000> : vector<2x24xf32>
    %34 = vector.multi_reduction <maximumf>, %33, %cst_9 [1] : vector<2x16x24xf32> to vector<2x24xf32>
    %c0_10 = arith.constant 0 : index
    %c0_11 = arith.constant 0 : index
    %35 = vector.load %arg4[%c0_10, %c0_11] : memref<24x3xf32, #tpu.memory_space<vmem>>, vector<24x3xf32>
    %cst_12 = arith.constant dense<0.000000e+00> : vector<2x3xf32>
    %36 = tpu.matmul %34, %35, %cst_12 {dimension_numbers = #tpu.dot_dimension_numbers<[1], [0], [0], [1], [0, 0, 1, 1], [], []>} : vector<2x24xf32>, vector<24x3xf32>, vector<2x3xf32> -> vector<2x3xf32>
    %c0_13 = arith.constant 0 : index
    %c0_14 = arith.constant 0 : index
    %37 = vector.load %arg5[%c0_13, %c0_14] : memref<1x3xf32, #tpu.memory_space<vmem>>, vector<1x3xf32>
    %38 = vector.broadcast %37 : vector<1x3xf32> to vector<2x3xf32>
    %39 = arith.addf %36, %38 : vector<2x3xf32>
    %c0_15 = arith.constant 0 : index
    %c0_16 = arith.constant 0 : index
    %40 = vector.load %arg6[%c0_15, %c0_16] : memref<2x3xf32, #tpu.memory_space<vmem>>, vector<2x3xf32>
    tpu.vector_store %arg6[%c0_15, %c0_16], %39 {strides = array<i32>} : memref<2x3xf32, #tpu.memory_space<vmem>>, vector<2x3xf32>,
    return
  }
}

</mosaic_0001>

<bundles_post_ra>
// kernel: textcnn_forward.1
= control target key start
LH: loop header
LB: loop body
LE: loop exit
PB: predicated region body
PF: predicated region fallthrough
CT: control target
= control target key end

     0   :  { %v783_v1 = vmov 2   ;;  %v784_v2 = vmov 0   ;;  %v785_v7 = vmov 0.0|0.0   ;;  %v786_v11 = vmov 3   ;;  %s1099_s0 = inlined_call_operand.vmem [shape: s32[32,4], index: 0, kind: input, shape index: {}]   ;;  %s1100_s1 = inlined_call_operand.vmem [shape: f32[200,128], index: 1, kind: input, shape index: {}]   ;;  %s1101_s2 = inlined_call_operand.vmem [shape: f32[128,24], index: 2, kind: input, shape index: {}]   ;;  %s1102_s3 = inlined_call_operand.vmem [shape: f32[32,24], index: 3, kind: input, shape index: {}]   ;;  %s1103_s4 = inlined_call_operand.vmem [shape: f32[24,3], index: 4, kind: input, shape index: {}]   ;;  %s1104_s5 = inlined_call_operand.vmem [shape: f32[1,3], index: 5, kind: input, shape index: {}]   ;;  %s1105_s6 = inlined_call_operand.hbm [shape: f32[2,3], index: 6, kind: output, shape index: {}]  }
   0x1   :  { %v24_v0 = vld [vmem:[%s1099_s0] sm:$0xff]  ;;  %745 = vset.pattern.permute.xlu1 %v783_v1  ;;  %744 = vset.pattern.permute.xlu0 %v784_v2  ;;  %v208_v4 = vld [vmem:[%s1100_s1 + $0x8] sm:$0xff]  ;;  %v209_v5 = vld [vmem:[%s1100_s1 + $0x10] sm:$0xff] }
   0x2   :  { %v207_v3 = vld [vmem:[%s1100_s1] sm:$0xff]  ;;  %120 = vperm.xlu1 %745, %v24_v0   ;;  %32 = vperm.xlu0 %744, %v24_v0   ;;  %v210_v6 = vld [vmem:[%s1100_s1 + $0x18] sm:$0xff]  ;;  %v25_v9 = vld [vmem:[%s1099_s0 + $0x8] sm:$0xff] }
   0x3   :  { %665 = vmatprep.subr.bf16.mxu0 %v785_v7  ;;  %v666_v8 = vpack.c.bf16 %v208_v4, %v207_v3  ;;  %v669_v10 = vpack.c.bf16 %v210_v6, %v209_v5  ;;  %v211_v12 = vld [vmem:[%s1100_s1 + $0x20] sm:$0xff]  ;;  %v212_v13 = vld [vmem:[%s1100_s1 + $0x28] sm:$0xff] }
   0x5   :  { %667 = vmatpush1.bf16.msra.mxu0 %v666_v8 }
   0x6   :  { %746 = vset.pattern.permute.xlu1 %v784_v2  ;;  %748 = vset.pattern.permute.xlu0 %v786_v11 }
   0x7   :  { %35 = vperm.xlu1 %746, %v25_v9   ;;  %164 = vperm.xlu0 %748, %v24_v0  }
   0x8   :  { %668 = vmatprep.subr.bf16.mxu0 %v785_v7 }
   0x9   :  { %11 = vsyncpa [#allocation3], 0  ;;  %670 = vmatpush1.bf16.msra.mxu0 %v669_v10  ;;  %v672_v14 = vpack.c.bf16 %v212_v13, %v211_v12  ;;  %v213_v15 = vld [vmem:[%s1100_s1 + $0x30] sm:$0xff]  ;;  %v214_v16 = vld [vmem:[%s1100_s1 + $0x38] sm:$0xff]  ;;  %v787_v17 = vmov 1   ;;  %v788_v48 = vmov 0.0   ;;  %v28_v62 = vlaneseq }
   0xa   :  { %671 = vmatprep.subr.bf16.mxu0 %v785_v7  ;;  %v26_v18 = vld [vmem:[%s1099_s0 + $0x10] sm:$0xff]  ;;  %v675_v19 = vpack.c.bf16 %v214_v16, %v213_v15  ;;  %v215_v20 = vld [vmem:[%s1100_s1 + $0x40] sm:$0xff]  ;;  %v216_v21 = vld [vmem:[%s1100_s1 + $0x48] sm:$0xff]  ;;  %vm232_vm8 = vcmask 588800   ;;  %s790_s23 = smov [#allocation2]  }
   0xb   :  { %747 = vset.pattern.permute.xlu1 %v787_v17  ;;  %749 = vset.pattern.permute.xlu0 %v787_v17  ;;  %v27_v22 = vld [vmem:[%s1099_s0 + $0x18] sm:$0xff]  ;;  %v678_v23 = vpack.c.bf16 %v216_v21, %v215_v20  ;;  %v217_v24 = vld [vmem:[%s1100_s1 + $0x50] sm:$0xff]  ;;  %v219_v27 = vld [vmem:[%s1100_s1 + $0x60] sm:$0xff]  ;;  %s548_s24 = sshll.u32 %s790_s23, 4  ;;  %s549_s24 = int_to_ptr.vmem [resolvable:$true] %s548_s24 }
   0xc   :  { %79 = vperm.xlu1 %747, %v25_v9   ;;  %76 = vperm.xlu0 %749, %v24_v0   ;;  %v218_v25 = vld [vmem:[%s1100_s1 + $0x58] sm:$0xff]  ;;  %v220_v28 = vld [vmem:[%s1100_s1 + $0x68] sm:$0xff]  ;;  %v221_v30 = vld [vmem:[%s1100_s1 + $0x70] sm:$0xff]  ;;  %s759_s25 = scalar_lea.vmem %s549_s24, 32  ;;  %p764_p1 = scmp.lt.s32.totalorder %s549_s24, %s549_s24 }
   0xd   :  { %673 = vmatpush1.bf16.msra.mxu0 %v672_v14  ;;  %v681_v26 = vpack.c.bf16 %v218_v25, %v217_v24  ;;  %v684_v29 = vpack.c.bf16 %v220_v28, %v219_v27  ;;  %v222_v31 = vld [vmem:[%s1100_s1 + $0x78] sm:$0xff]  ;;  %v223_v33 = vld [vmem:[%s1100_s1 + $0x80] sm:$0xff]  ;;  %v224_v34 = vld [vmem:[%s1100_s1 + $0x88] sm:$0xff]  ;;  %p760_p0 = scmp.ne.s32.totalorder %s549_s24, %s759_s25  ;;  %p765_p2 = scmp.lt.s32.totalorder %s759_s25, %s759_s25 }
   0xe   :  { %674 = vmatprep.subr.bf16.mxu0 %v785_v7  ;;  %v687_v32 = vpack.c.bf16 %v222_v31, %v221_v30  ;;  %v690_v35 = vpack.c.bf16 %v224_v34, %v223_v33  ;;  %v225_v36 = vld [vmem:[%s1100_s1 + $0x90] sm:$0xff]  ;;  %v226_v37 = vld [vmem:[%s1100_s1 + $0x98] sm:$0xff]  ;;  %v227_v39 = vld [vmem:[%s1100_s1 + $0xa0] sm:$0xff] }
   0xf   :  { %v693_v38 = vpack.c.bf16 %v226_v37, %v225_v36  ;;  %v228_v40 = vld [vmem:[%s1100_s1 + $0xa8] sm:$0xff]  ;;  %v229_v42 = vld [vmem:[%s1100_s1 + $0xb0] sm:$0xff]  ;;  %v230_v43 = vld [vmem:[%s1100_s1 + $0xb8] sm:$0xff]  ;;  %p766_p3 = por %p765_p2, %p764_p1 }
  0x10   :  { %750 = vset.pattern.permute.xlu1 %v783_v1  ;;  %82 = vperm.xlu0 %749, %v26_v18   ;;  %v696_v41 = vpack.c.bf16 %v228_v40, %v227_v39  ;;  %v699_v44 = vpack.c.bf16 %v230_v43, %v229_v42  ;;  %v330_v45 = vld [vmem:[%s1101_s2] sm:$0xff]  ;;  %v331_v46 = vld [vmem:[%s1101_s2 + $0x8] sm:$0xff]  ;;  %v332_v47 = vld [vmem:[%s1101_s2 + $0x10] sm:$0xff] }
  0x11   :  { %123 = vperm.xlu1 %750, %v25_v9   ;;  %676 = vmatpush1.bf16.msra.mxu0 %v675_v19  ;;  %v231_v49 = vld [vmem:[%s1100_s1 + $0xc0] sm:$0xff]  ;;  %v701_v50 = vpack.c.bf16 %v331_v46, %v330_v45  ;;  %v333_v51 = vld [vmem:[%s1101_s2 + $0x18] sm:$0xff]  ;;  %v335_v54 = vld [vmem:[%s1101_s2 + $0x28] sm:$0xff]  ;;  %p767_p4 = pnand %p766_p3, %p760_p0 }
  0x12   :  { %677 = vmatprep.subr.bf16.mxu0 %v785_v7  ;;  %v705_v52 = vpack.c.bf16 %v333_v51, %v332_v47  ;;  %v334_v53 = vld [vmem:[%s1101_s2 + $0x20] sm:$0xff]  ;;  %v336_v56 = vld [vmem:[%s1101_s2 + $0x30] sm:$0xff]  ;;  %v337_v57 = vld [vmem:[%s1101_s2 + $0x38] sm:$0xff] }
  0x13   :  { %702 = vmatprep.subr.bf16.mxu1 %v701_v50  ;;  %v709_v55 = vpack.c.bf16 %v335_v54, %v334_v53  ;;  %v713_v58 = vpack.c.bf16 %v337_v57, %v336_v56  ;;  %v338_v59 = vld [vmem:[%s1101_s2 + $0x40] sm:$0xff]  ;;  %v339_v60 = vld [vmem:[%s1101_s2 + $0x48] sm:$0xff] }
  0x14   :  { %754 = vset.pattern.permute.xlu0 %v784_v2  ;;  %704 = vmatpush3.bf16.msra.mxu1 %v701_v50  ;;  %v717_v61 = vpack.c.bf16 %v339_v60, %v338_v59 }
  0x15   :  { %751 = vset.pattern.permute.xlu1 %v784_v2  ;;  %41 = vperm.xlu0 %754, %v27_v22  }
  0x16   :  { %38 = vperm.xlu1 %751, %v26_v18   ;;  %679 = vmatpush1.bf16.msra.mxu0 %v678_v23 }
  0x17   :  { %680 = vmatprep.subr.bf16.mxu0 %v785_v7  ;;  %706 = vmatprep.subr.bf16.mxu1 %v705_v52 }
  0x18   :  { %708 = vmatpush3.bf16.msra.mxu1 %v705_v52 }
  0x19   :  { %757 = vset.pattern.permute.xlu0 %v783_v1  ;;  %710 = vmatprep.subr.bf16.mxu1 %v709_v55 }
  0x1a   :  { %752 = vset.pattern.permute.xlu1 %v786_v11  ;;  %129 = vperm.xlu0 %757, %v27_v22  }
  0x1b   :  { %167 = vperm.xlu1 %752, %v25_v9   ;;  %682 = vmatpush1.bf16.msra.mxu0 %v681_v26 }
  0x1c   :  { %683 = vmatprep.subr.bf16.mxu0 %v785_v7  ;;  %712 = vmatpush3.bf16.msra.mxu1 %v709_v55 }
  0x1d   :  { %714 = vmatprep.subr.bf16.mxu1 %v713_v58 }
  0x1e   :  { %758 = vset.pattern.permute.xlu0 %v786_v11 }
  0x1f   :  { %753 = vset.pattern.permute.xlu1 %v783_v1  ;;  %685 = vmatpush1.bf16.msra.mxu0 %v684_v29  ;;  %v964_v1 = vand.u32 127, %v28_v62 }
  0x20   :  { %126 = vperm.xlu1 %753, %v26_v18   ;;  %686 = vmatprep.subr.bf16.mxu0 %v785_v7 }
  0x21   :  { %716 = vmatpush3.bf16.msra.mxu1 %v713_v58  ;;  %v967_v2 = vadd.s32 128, %v964_v1 }
  0x22   :  { %718 = vmatprep.subr.bf16.mxu1 %v717_v61 }
  0x23   :  { %688 = vmatpush1.bf16.msra.mxu0 %v687_v32 }
  0x24   :  { %755 = vset.pattern.permute.xlu1 %v787_v17  ;;  %689 = vmatprep.subr.bf16.mxu0 %v785_v7 }
  0x25   :  { %85 = vperm.xlu1 %755, %v27_v22   ;;  %720 = vmatpush3.bf16.msra.mxu1 %v717_v61 }
  0x27   :  { %691 = vmatpush1.bf16.msra.mxu0 %v690_v35 }
  0x28   :  { %692 = vmatprep.subr.bf16.mxu0 %v785_v7 }
  0x29   :  { %756 = vset.pattern.permute.xlu1 %v786_v11 }
  0x2a   :  { %170 = vperm.xlu1 %756, %v26_v18  }
  0x2b   :  { %694 = vmatpush1.bf16.msra.mxu0 %v693_v38 }
  0x2c   :  { %695 = vmatprep.subr.bf16.mxu0 %v785_v7 }
  0x2e   :  { %173 = vperm.xlu1 %756, %v27_v22  }
  0x2f   :  { %697 = vmatpush1.bf16.msra.mxu0 %v696_v41 }
  0x30   :  { %698 = vmatprep.subr.bf16.mxu0 %v785_v7 }
  0x33   :  { %700 = vmatpush1.bf16.msra.mxu0 %v699_v44 }
  0x34   :  { %293 = vmatprep.subr.mxu0 %v788_v48 }
  0x37   :  { %294 = vmatpush1.msra.mxu0 %v231_v49 }
  0x81   :  { %v121_v63 = vpop.permute.xlu1 %120  ;;  %v33_v0 = vpop.permute.xlu0 %32 }
  0x82   :  { %vm43_vm0 = vcmp.eq.s32.totalorder %v33_v0, %v964_v1  ;;  %vm44_vm1 = vcmp.eq.s32.totalorder %v33_v0, %v967_v2  ;;  %vm131_vm2 = vcmp.eq.s32.totalorder %v121_v63, %v964_v1  ;;  %vm132_vm3 = vcmp.eq.s32.totalorder %v121_v63, %v967_v2 }
  0x83   :  { %v556_v5 = vsel %vm43_vm0, 1.0, %v788_v48  ;;  %v557_v6 = vsel %vm44_vm1, 1.0, %v788_v48  ;;  %v572_v14 = vsel %vm131_vm2, 1.0, %v788_v48  ;;  %v573_v15 = vsel %vm132_vm3, 1.0, %v788_v48 }
  0x86   :  { %v36_v3 = vpop.permute.xlu1 %35  ;;  %v165_v4 = vpop.permute.xlu0 %164 }
  0x87   :  { %vm175_vm4 = vcmp.eq.s32.totalorder %v165_v4, %v964_v1  ;;  %vm176_vm5 = vcmp.eq.s32.totalorder %v165_v4, %v967_v2  ;;  %vm45_vm11 = vcmp.eq.s32.totalorder %v36_v3, %v964_v1  ;;  %vm46_vm12 = vcmp.eq.s32.totalorder %v36_v3, %v967_v2 }
  0x88   :  { %v580_v16 = vsel %vm175_vm4, 1.0, %v788_v48  ;;  %v581_v17 = vsel %vm176_vm5, 1.0, %v788_v48  ;;  %v558_v26 = vsel %vm45_vm11, 1.0, %v788_v48  ;;  %v559_v27 = vsel %vm46_vm12, 1.0, %v788_v48 }
  0x8b   :  { %v80_v8 = vpop.permute.xlu1 %79  ;;  %v77_v9 = vpop.permute.xlu0 %76 }
  0x8c   :  { %vm87_vm6 = vcmp.eq.s32.totalorder %v77_v9, %v964_v1  ;;  %vm88_vm7 = vcmp.eq.s32.totalorder %v77_v9, %v967_v2  ;;  %vm89_vm9 = vcmp.eq.s32.totalorder %v80_v8, %v964_v1  ;;  %vm90_vm10 = vcmp.eq.s32.totalorder %v80_v8, %v967_v2 }
  0x8d   :  { %v564_v10 = vsel %vm87_vm6, 1.0, %v788_v48  ;;  %v565_v11 = vsel %vm88_vm7, 1.0, %v788_v48  ;;  %v566_v24 = vsel %vm89_vm9, 1.0, %v788_v48  ;;  %v567_v25 = vsel %vm90_vm10, 1.0, %v788_v48 }
  0x8e   :  { %v111_v12 = vadd.f32 %v564_v10, %v556_v5  ;;  %v112_v13 = vadd.f32 %v565_v11, %v557_v6  ;;  %v113_v30 = vadd.f32 %v566_v24, %v558_v26  ;;  %v114_v31 = vadd.f32 %v567_v25, %v559_v27 }
  0x8f   :  { %v83_v35 = vpop.permute.xlu0 %82 }
  0x90   :  { %v155_v18 = vadd.f32 %v572_v14, %v111_v12  ;;  %v124_v19 = vpop.permute.xlu1 %123  ;;  %v156_v20 = vadd.f32 %v573_v15, %v112_v13  ;;  %vm91_vm3 = vcmp.eq.s32.totalorder %v83_v35, %v964_v1  ;;  %vm92_vm4 = vcmp.eq.s32.totalorder %v83_v35, %v967_v2  ;;  %v340_v14 = vld [vmem:[%s1101_s2 + $0x50] sm:$0xff]  ;;  %v342_v15 = vld [vmem:[%s1101_s2 + $0x60] sm:$0xff] }
  0x91   :  { %vm133_vm13 = vcmp.eq.s32.totalorder %v124_v19, %v964_v1  ;;  %vm134_vm14 = vcmp.eq.s32.totalorder %v124_v19, %v967_v2  ;;  %v568_v44 = vsel %vm91_vm3, 1.0, %v788_v48  ;;  %v569_v45 = vsel %vm92_vm4, 1.0, %v788_v48  ;;  %v345_v19 = vld [vmem:[%s1101_s2 + $0x78] sm:$0xff] }
  0x92   :  { %v200_v21 = vadd.f32 %v581_v17, %v156_v20  ;;  %v199_v22 = vadd.f32 %v580_v16, %v155_v18  ;;  %v574_v28 = vsel %vm133_vm13, 1.0, %v788_v48  ;;  %v575_v29 = vsel %vm134_vm14, 1.0, %v788_v48  ;;  %v343_v16 = vld [vmem:[%s1101_s2 + $0x68] sm:$0xff]  ;;  %v344_v17 = vld [vmem:[%s1101_s2 + $0x70] sm:$0xff] }
  0x93   :  { %v157_v33 = vadd.f32 %v574_v28, %v113_v30  ;;  %v158_v34 = vadd.f32 %v575_v29, %v114_v31  ;;  %v725_v18 = vpack.c.bf16 %v343_v16, %v342_v15  ;;  %v729_v20 = vpack.c.bf16 %v345_v19, %v344_v17  ;;  %v454_v29 = vld [vmem:[%s1103_s4] sm:$0xff]  ;;  %v456_v31 = vld [vmem:[%s1103_s4 + $0x10] sm:$0xff] }
  0x94   :  { %588 = vmatprep.mubr.msk.f32.mxu0 %vm232_vm8, %v200_v21  ;;  %v42_v41 = vpop.permute.xlu0 %41  ;;  %vm466_vm3 = vcmask 1041409   ;;  %vm540_vm4 = vcmask 17408  }
  0x95   :  { %v39_v23 = vpop.permute.xlu1 %38  ;;  %310 = vmatmul.mubr.f32.vlgmr.msra.gmra.mrb[0].mxu0 %v199_v22  ;;  %vm49_vm7 = vcmp.eq.s32.totalorder %v42_v41, %v964_v1  ;;  %vm50_vm9 = vcmp.eq.s32.totalorder %v42_v41, %v967_v2  ;;  %v349_v41 = vld [vmem:[%s1102_s3 + $0x18] sm:$0xff] }
  0x96   :  { %vm47_vm1 = vcmp.eq.s32.totalorder %v39_v23, %v964_v1  ;;  %vm48_vm2 = vcmp.eq.s32.totalorder %v39_v23, %v967_v2  ;;  %v562_v51 = vsel %vm49_vm7, 1.0, %v788_v48  ;;  %v563_v52 = vsel %vm50_vm9, 1.0, %v788_v48 }
  0x97   :  { %v560_v42 = vsel %vm47_vm1, 1.0, %v788_v48  ;;  %v561_v43 = vsel %vm48_vm2, 1.0, %v788_v48  ;;  %vm435_vm2 = vcmask 195584  }
  0x98   :  { %v115_v53 = vadd.f32 %v568_v44, %v560_v42  ;;  %v116_v54 = vadd.f32 %v569_v45, %v561_v43  ;;  %v348_v42 = vld [vmem:[%s1102_s3 + $0x10] sm:$0xff] }
  0x99   :  { %v130_v47 = vpop.permute.xlu0 %129 }
  0x9a   :  { %v168_v32 = vpop.permute.xlu1 %167  ;;  %vm137_vm12 = vcmp.eq.s32.totalorder %v130_v47, %v964_v1  ;;  %vm138_vm13 = vcmp.eq.s32.totalorder %v130_v47, %v967_v2 }
  0x9b   :  { %vm177_vm15 = vcmp.eq.s32.totalorder %v168_v32, %v964_v1  ;;  %vm178_vm0 = vcmp.eq.s32.totalorder %v168_v32, %v967_v2  ;;  %v578_v62 = vsel %vm137_vm12, 1.0, %v788_v48  ;;  %v579_v63 = vsel %vm138_vm13, 1.0, %v788_v48  ;;  %v347_v32 = vld [vmem:[%s1102_s3 + $0x8] sm:$0xff] }
  0x9c   :  { %v582_v36 = vsel %vm177_vm15, 1.0, %v788_v48  ;;  %v583_v37 = vsel %vm178_vm0, 1.0, %v788_v48 }
  0x9d   :  { %v201_v38 = vadd.f32 %v582_v36, %v157_v33  ;;  %v202_v39 = vadd.f32 %v583_v37, %v158_v34  ;;  %v346_v33 = vld [vmem:[%s1102_s3] sm:$0xff] }
  0x9f   :  { %v127_v40 = vpop.permute.xlu1 %126  ;;  %589 = vmatprep.mubr.msk.f32.mxu0 %vm232_vm8, %v202_v39 }
  0xa0   :  { %315 = vmatmul.mubr.f32.gmra.mrb[2].mxu0 %v201_v38  ;;  %vm135_vm5 = vcmp.eq.s32.totalorder %v127_v40, %v964_v1  ;;  %vm136_vm6 = vcmp.eq.s32.totalorder %v127_v40, %v967_v2 }
  0xa1   :  { %v576_v49 = vsel %vm135_vm5, 1.0, %v788_v48  ;;  %v577_v50 = vsel %vm136_vm6, 1.0, %v788_v48 }
  0xa2   :  { %v159_v57 = vadd.f32 %v576_v49, %v115_v53  ;;  %v160_v58 = vadd.f32 %v577_v50, %v116_v54 }
  0xa4   :  { %v86_v46 = vpop.permute.xlu1 %85 }
  0xa5   :  { %vm93_vm10 = vcmp.eq.s32.totalorder %v86_v46, %v964_v1  ;;  %vm94_vm11 = vcmp.eq.s32.totalorder %v86_v46, %v967_v2 }
  0xa6   :  { %v570_v55 = vsel %vm93_vm10, 1.0, %v788_v48  ;;  %v571_v56 = vsel %vm94_vm11, 1.0, %v788_v48 }
  0xa7   :  { %v117_v60 = vadd.f32 %v570_v55, %v562_v51  ;;  %v118_v61 = vadd.f32 %v571_v56, %v563_v52 }
  0xa9   :  { %v171_v59 = vpop.permute.xlu1 %170  ;;  %v161_v8 = vadd.f32 %v578_v62, %v117_v60  ;;  %v162_v9 = vadd.f32 %v579_v63, %v118_v61  ;;  %v592_v63 = vld [vmem:[%s1104_s5] ss:$0 sm:$0xff] }
  0xaa   :  { %vm179_vm14 = vcmp.eq.s32.totalorder %v171_v59, %v964_v1  ;;  %vm180_vm15 = vcmp.eq.s32.totalorder %v171_v59, %v967_v2 }
  0xab   :  { %v584_v0 = vsel %vm179_vm14, 1.0, %v788_v48  ;;  %v585_v3 = vsel %vm180_vm15, 1.0, %v788_v48 }
  0xac   :  { %v203_v4 = vadd.f32 %v584_v0, %v159_v57  ;;  %v204_v5 = vadd.f32 %v585_v3, %v160_v58 }
  0xad   :  { %v174_v6 = vpop.permute.xlu1 %173 }
  0xae   :  { %vm181_vm0 = vcmp.eq.s32.totalorder %v174_v6, %v964_v1  ;;  %vm182_vm1 = vcmp.eq.s32.totalorder %v174_v6, %v967_v2  ;;  %590 = vmatprep.mubr.msk.f32.mxu0 %vm232_vm8, %v204_v5  ;;  %v341_v1 = vld [vmem:[%s1101_s2 + $0x58] sm:$0xff] }
  0xaf   :  { %v586_v10 = vsel %vm181_vm0, 1.0, %v788_v48  ;;  %v587_v11 = vsel %vm182_vm1, 1.0, %v788_v48  ;;  %320 = vmatmul.mubr.f32.gmra.mrb[4].mxu0 %v203_v4  ;;  %v721_v2 = vpack.c.bf16 %v341_v1, %v340_v14 }
  0xb0   :  { %v205_v12 = vadd.f32 %v586_v10, %v161_v8  ;;  %v206_v13 = vadd.f32 %v587_v11, %v162_v9 }
  0xb1   :  { %722 = vmatprep.subr.bf16.mxu1 %v721_v2 }
  0xb2   :  { %591 = vmatprep.mubr.msk.f32.mxu0 %vm232_vm8, %v206_v13  ;;  %724 = vmatpush3.bf16.msra.mxu1 %v721_v2  ;;  %vm789_vm8 = vmmov 0  }
  0xb3   :  { %325 = vmatmul.mubr.f32.gmra.mrb[6].mxu0 %v205_v12  ;;  %726 = vmatprep.subr.bf16.mxu1 %v725_v18 }
  0xb6   :  { %728 = vmatpush3.bf16.msra.mxu1 %v725_v18 }
  0xb7   :  { %730 = vmatprep.subr.bf16.mxu1 %v729_v20 }
  0xba   :  { %732 = vmatpush3.bf16.msra.mxu1 %v729_v20 }
  0xbb   :  { %733 = vmatprep.subr.bf16.mxu1 %v785_v7  ;;  %v455_v7 = vld [vmem:[%s1103_s4 + $0x8] sm:$0xff] }
  0xbc   :  { %v734_v30 = vpack.c.bf16 %v455_v7, %v454_v29 }
 0x168   :  { %v311_v21 = vpop.f32.mrb[0].mxu0 }
 0x169   :  { %v313_v22 = vpop.f32.mrb[1].mxu0  ;;  %650 = vmatprep.mubr.f32.mxu1 %v311_v21 }
 0x173   :  { %v316_v23 = vpop.f32.mrb[2].mxu0 }
 0x174   :  { %v318_v24 = vpop.f32.mrb[3].mxu0  ;;  %651 = vmatmul.mubr.f32.vlgmr.msra.gmra.mrb[0].mxu1 %v316_v23 }
 0x175   :  { %735 = vmatpush3.bf16.msra.mxu1 %v734_v30 }
 0x176   :  { %660 = vmatprep.subr.mxu1 %v788_v48 }
 0x179   :  { %661 = vmatpush3.msra.mxu1 %v456_v31 }
 0x182   :  { %v321_v25 = vpop.f32.mrb[4].mxu0 }
 0x183   :  { %v323_v26 = vpop.f32.mrb[5].mxu0  ;;  %653 = vmatprep.mubr.f32.mxu1 %v321_v25 }
 0x186   :  { %v326_v27 = vpop.f32.mrb[6].mxu0 }
 0x187   :  { %v328_v28 = vpop.f32.mrb[7].mxu0  ;;  %654 = vmatmul.mubr.f32.gmra.mrb[2].mxu1 %v326_v27 }
 0x188   :  { %662 = vmatprep.mubr.msk.f32.mxu1 %vm789_vm8, %v788_v48 }
 0x247   :  { %v652_v34 = vpop.f32.mrb[0].mxu1 }
 0x248   :  { %v422_v35 = vadd.f32 %v652_v34, %v347_v32  ;;  %v416_v36 = vpop.f32.mrb[1].mxu1 }
 0x249   :  { %v417_v37 = vadd.f32 %v416_v36, %v346_v33 }
 0x24a   :  { %v437_v38 = vsel %vm435_vm2, %v422_v35, -inf }
 0x24b   :  { %v436_v39 = vsel %vm435_vm2, %v417_v37, -inf }
 0x24c   :  { %v438_v40 = vmax.f32 %v436_v39, %v437_v38 }
 0x24e   :  { %v439_v48 = vrot.slane %v438_v40, 4 }
 0x250   :  { %v440_v44 = vmax.f32 %v438_v40, %v439_v48 }
 0x252   :  { %v441_v51 = vrot.slane %v440_v44, 2 }
 0x254   :  { %v442_v54 = vmax.f32 %v440_v44, %v441_v51 }
 0x256   :  { %v443_v57 = vrot.slane %v442_v54, 1 }
 0x258   :  { %v444_v60 = vmax.f32 %v442_v54, %v443_v57 }
 0x25a   :  { %v655_v43 = vpop.f32.mrb[2].mxu1 }
 0x25b   :  { %v432_v45 = vadd.f32 %v655_v43, %v349_v41  ;;  %v426_v46 = vpop.f32.mrb[3].mxu1 }
 0x25c   :  { %v427_v47 = vadd.f32 %v426_v46, %v348_v42 }
 0x25d   :  { %v446_v49 = vsel %vm435_vm2, %v432_v45, -inf }
 0x25e   :  { %v445_v50 = vsel %vm435_vm2, %v427_v47, -inf }
 0x25f   :  { %v447_v52 = vmax.f32 %v445_v50, %v446_v49 }
 0x261   :  { %v448_v53 = vrot.slane %v447_v52, 4 }
 0x263   :  { %v449_v55 = vmax.f32 %v447_v52, %v448_v53 }
 0x265   :  { %v450_v56 = vrot.slane %v449_v55, 2 }
 0x267   :  { %v451_v58 = vmax.f32 %v449_v55, %v450_v56 }
 0x269   :  { %v452_v59 = vrot.slane %v451_v58, 1 }
 0x26b   :  { %v453_v61 = vmax.f32 %v451_v58, %v452_v59 }
 0x26d   :  { %v467_v62 = vsel %vm466_vm3, %v453_v61, %v444_v60 }
 0x26e   :  { %663 = vmatmul.mubr.msk.f32.vlgmr.msra.gmra.mrb[4].mxu1 %vm435_vm2, %v467_v62 }
 0x341   :  { %v536_v0 = vpop.f32.mrb[4].mxu1 }
 0x342   :  { %v537_v3 = vadd.f32 %v592_v63, %v536_v0  ;;  %v664_v4 = vpop.f32.mrb[5].mxu1 }
 0x344   :  { %541 = vst.msk [vmem:[#allocation2] sm:$0x3] %vm540_vm4, %v537_v3 }
 0x345   :  { %770 = shalt.err (!%p767_p4)
}
 0x346   :  { %s771_s28 = scalar_lea.hbm %s1105_s6, 32 }
 0x347   :  { %p772_p5 = scmp.ne.s32.totalorder %s1105_s6, %s771_s28  ;;  %p775_p6 = scmp.lt.u32.totalorder %s771_s28, %s1105_s6 }
 0x349   :  { %p777_p7 = pnand %p775_p6, %p772_p5 }
 0x34b   :  { %780 = shalt.err (!%p777_p7)
}
 0x34c   :  { %551 = dma.vmem_to_hbm [thread:$0]  %s549_s24, 32, %s1105_s6, [#allocation3]  }
 0x34d   :  { %781 = dma.done.wait [#allocation3], 32  }
 0x34e   :  { %782 = vsyncadd [#allocation3], 4294967264 }
 0x34f   :  { %555 = vsyncpa [#allocation3], 1 }

</bundles_post_ra>
